<compile_context>
chip_gen: v7x
topology: tpu7x:2x2x1
jax: 0.10.0
libtpu: 0.0.40
codegen_flags: <defaults>
</compile_context>

<pallas_src>
import jax
import jax.numpy as jnp
from jax.experimental import pallas as pl
from jax.experimental.pallas import tpu as pltpu

_COPY_THRESHOLD_BYTES = 512 * 1024   # below this, a copy is pure overhead -> jnp.reshape
_MIN_CHUNK_BYTES = 1 * 1024 * 1024   # aim for >= 1 MiB per outstanding DMA
_MAX_CHUNKS = 8                      # keep several DMA queues busy
_LANE = 128


def _infer_shape(shape, total):
    """torch .view() shape semantics, including a single -1 inferred dim."""
    shape = tuple(int(d) for d in shape)
    if -1 in shape:
        assert shape.count(-1) == 1, "only one -1 dimension allowed"
        known = 1
        for d in shape:
            if d != -1:
                known *= d
        assert known > 0 and total % known == 0, \
            f"cannot infer -1 for total={total} with shape={shape}"
        shape = tuple(total // known if d == -1 else d for d in shape)
    tgt = 1
    for d in shape:
        tgt *= d
    assert tgt == total, f"cannot view {total} elements as {shape}"
    return shape


def _flat_layout(total):
    """Pick a lane-dense 2-D (rows, cols) layout so DMA chunks are contiguous
    row blocks.  Misaligned totals fall back to a single whole-array DMA."""
    for cols in (1024, 512, 256, _LANE):
        if total % cols == 0:
            return total // cols, cols
    return 1, total


def _dma_copy_call(rows, cols, dtype, n_chunks):
    """Build a pallas_call that copies a (rows, cols) array directly HBM->HBM
    with `n_chunks` outstanding DMAs (chunked along the row axis)."""
    base, rem = divmod(rows, n_chunks)
    bounds = []
    start = 0
    for k in range(n_chunks):
        size = base + (1 if k < rem else 0)
        bounds.append((start, size))
        start += size

    def kernel(x_ref, o_ref, sems):
        # Issue all chunk DMAs first (multiple outstanding copies), then wait.
        copies = []
        for k, (s, sz) in enumerate(bounds):
            cp = pltpu.make_async_copy(
                x_ref.at[pl.ds(s, sz)],
                o_ref.at[pl.ds(s, sz)],
                sems.at[k],
            )
            cp.start()
            copies.append(cp)
        for cp in copies:
            cp.wait()

    return pl.pallas_call(
        kernel,
        out_shape=jax.ShapeDtypeStruct((rows, cols), dtype),
        in_specs=[pl.BlockSpec(memory_space=pl.ANY)],
        out_specs=pl.BlockSpec(memory_space=pl.ANY),
        scratch_shapes=[pltpu.SemaphoreType.DMA((n_chunks,))],
    )


def pallas_reshape(x, shape, copy="auto"):
    """Equivalent of torch.Tensor.view(shape) for a contiguous tensor.

    copy="auto": zero-copy (jnp.reshape) for tensors below ~512 KiB / empty
                 tensors; direct HBM->HBM DMA copy otherwise.
    copy=True:   always run the Pallas DMA-copy kernel.
    copy=False:  always use the free metadata-only reshape.
    """
    total = int(x.size)
    shape = _infer_shape(shape, total)
    itemsize = jnp.dtype(x.dtype).itemsize
    total_bytes = total * itemsize

    do_copy = (copy is True) or (
        copy == "auto" and total_bytes >= _COPY_THRESHOLD_BYTES)
    if total == 0 or not do_copy:
        # Contiguous view == pure metadata: zero HBM traffic, no kernel launch.
        return jnp.reshape(x, shape)

    rows, cols = _flat_layout(total)
    n_chunks = max(1, min(_MAX_CHUNKS, total_bytes // _MIN_CHUNK_BYTES, rows))

    flat = x.reshape(rows, cols)                               # metadata only
    out_flat = _dma_copy_call(rows, cols, x.dtype, n_chunks)(flat)
    # TODO(synk): when the caller can donate `x`, pass input_output_aliases to
    # skip the copy entirely and match torch .view() aliasing semantics.
    return out_flat.reshape(shape)                             # metadata only


class Reshape:
    """JAX/Pallas port of the PyTorch Reshape module (no parameters)."""

    def __init__(self, *args):
        self.shape = args

    def __call__(self, x):
        return pallas_reshape(x, self.shape)


if __name__ == "__main__":
    key = jax.random.PRNGKey(0)

    # Small NCHW-style input, matching the VAE usage: (2, 4, 16, 16) = 8 KiB.
    x = jax.random.normal(key, (2, 4, 16, 16), dtype=jnp.float32)

    # 1) Flatten conv features before an FC layer (zero-copy fast path).
    y = jax.block_until_ready(Reshape(2, 4 * 16 * 16)(x))
    assert y.shape == (2, 1024) and y.dtype == x.dtype
    assert bool(jnp.array_equal(y, jnp.reshape(x, (2, 1024))))

    # 2) Multi-dim target shape.
    y2 = jax.block_until_ready(Reshape(2, 16, 8, 8)(x))
    assert bool(jnp.array_equal(y2, jnp.reshape(x, (2, 16, 8, 8))))

    # 3) -1 inferred dimension (torch .view semantics).
    y3 = jax.block_until_ready(Reshape(-1, 256)(x))
    assert y3.shape == (8, 256)
    assert bool(jnp.array_equal(y3, jnp.reshape(x, (-1, 256))))

    # 4) Force the Pallas HBM->HBM DMA kernel on the small tensor (bit-exact).
    yk = jax.block_until_ready(pallas_reshape(x, (2, 1024), copy=True))
    assert bool(jnp.array_equal(yk, jnp.reshape(x, (2, 1024))))

    # 5) bf16 through the forced-copy kernel.
    xb = x.astype(jnp.bfloat16)
    yb = jax.block_until_ready(pallas_reshape(xb, (2, 1024), copy=True))
    assert yb.dtype == jnp.bfloat16
    assert bool(jnp.array_equal(yb, jnp.reshape(xb, (2, 1024))))

    # 6) ~2 MiB f32 tensor: above the copy threshold -> chunked HBM->HBM DMAs.
    k2 = jax.random.PRNGKey(1)
    xl = jax.random.normal(k2, (8, 32, 64, 32), dtype=jnp.float32)
    yl = jax.block_until_ready(Reshape(8, 32 * 64 * 32)(xl))
    assert yl.shape == (8, 32 * 64 * 32)
    assert bool(jnp.array_equal(yl, jnp.reshape(xl, (8, 32 * 64 * 32))))

    # 7) Empty tensor short-circuits to the metadata-only path.
    xe = jnp.zeros((0, 4, 16, 16), jnp.float32)
    ye = jax.block_until_ready(Reshape(0, 1024)(xe))
    assert ye.shape == (0, 1024)

    print("KERNEL_OK")
</pallas_src>

<mosaic_0001>
module attributes {stable_mosaic.version = 11 : i64} {
  func.func @kernel(%arg0: memref<2x1024xf32, #tpu.memory_space<any>>, %arg1: memref<2x1024xf32, #tpu.memory_space<any>>, %arg2: memref<1x!tpu.dma_semaphore, #tpu.memory_space<semaphore_mem>>) attributes {dimension_semantics = [], scalar_prefetch = 0 : i64, scratch_operands = 1 : i64, tpu.core_type = #tpu.core_type<tc>} {
    %c0_i32 = arith.constant 0 : i32
    %c0_i32_0 = arith.constant 0 : i32
    %c0_i32_1 = arith.constant 0 : i32
    %0 = tpu.memref_slice %arg0[%c0_i32_0, %c0_i32_1] : memref<2x1024xf32, #tpu.memory_space<any>> -> memref<2x1024xf32, #tpu.memory_space<any>>
    %c0_i32_2 = arith.constant 0 : i32
    %c0_i32_3 = arith.constant 0 : i32
    %1 = tpu.memref_slice %arg1[%c0_i32_2, %c0_i32_3] : memref<2x1024xf32, #tpu.memory_space<any>> -> memref<2x1024xf32, #tpu.memory_space<any>>
    %2 = tpu.memref_slice %arg2[%c0_i32] : memref<1x!tpu.dma_semaphore, #tpu.memory_space<semaphore_mem>> -> memref<1x!tpu.dma_semaphore, #tpu.memory_space<semaphore_mem>>
    %3 = tpu.memref_squeeze %2 : memref<1x!tpu.dma_semaphore, #tpu.memory_space<semaphore_mem>> -> memref<!tpu.dma_semaphore, #tpu.memory_space<semaphore_mem>>
    tpu.enqueue_dma source(%0 : memref<2x1024xf32, #tpu.memory_space<any>>) target(%1 : memref<2x1024xf32, #tpu.memory_space<any>>) target_semaphore(%3 : memref<!tpu.dma_semaphore, #tpu.memory_space<semaphore_mem>>)
    %c0_i32_4 = arith.constant 0 : i32
    %c0_i32_5 = arith.constant 0 : i32
    %c0_i32_6 = arith.constant 0 : i32
    %4 = tpu.memref_slice %arg0[%c0_i32_5, %c0_i32_6] : memref<2x1024xf32, #tpu.memory_space<any>> -> memref<2x1024xf32, #tpu.memory_space<any>>
    %c0_i32_7 = arith.constant 0 : i32
    %c0_i32_8 = arith.constant 0 : i32
    %5 = tpu.memref_slice %arg1[%c0_i32_7, %c0_i32_8] : memref<2x1024xf32, #tpu.memory_space<any>> -> memref<2x1024xf32, #tpu.memory_space<any>>
    %6 = tpu.memref_slice %arg2[%c0_i32_4] : memref<1x!tpu.dma_semaphore, #tpu.memory_space<semaphore_mem>> -> memref<1x!tpu.dma_semaphore, #tpu.memory_space<semaphore_mem>>
    %7 = tpu.memref_squeeze %6 : memref<1x!tpu.dma_semaphore, #tpu.memory_space<semaphore_mem>> -> memref<!tpu.dma_semaphore, #tpu.memory_space<semaphore_mem>>
    tpu.wait_dma2 semaphore(%7 : memref<!tpu.dma_semaphore, #tpu.memory_space<semaphore_mem>>) src(%4 : memref<2x1024xf32, #tpu.memory_space<any>>) dst(%5 : memref<2x1024xf32, #tpu.memory_space<any>>)
    return
  }
}

</mosaic_0001>

<bundles_post_ra>
// kernel: tpu_custom_call.1
= control target key start
LH: loop header
LB: loop body
LE: loop exit
PB: predicated region body
PF: predicated region fallthrough
CT: control target
= control target key end

     0   :  { %s35_s6 = smov [#allocation2]   ;;  %s36_s7 = smov [#allocation3]   ;;  %s54_s0 = inlined_call_operand.hbm [shape: f32[2,1024], index: 0, kind: input, shape index: {}]   ;;  %s55_s1 = inlined_call_operand.hbm [shape: f32[2,1024], index: 1, kind: output, shape index: {}]  }
   0x1   :  { %s37_s8 = smov 0  }
   0x2   :  { %18 = dma.general %s54_s0, 256, %s55_s1, %s35_s6, %s36_s7, [#allocation4], %s37_s8, 0  }
   0x3   :  { %33 = dma.done.wait [#allocation2], 256 }
   0x4   :  { %34 = vsyncadd [#allocation2], 4294967040 }
   0x5   :  { %23 = vsyncmov [#allocation2] }
   0x8   :  { %s24_s13 = vpop.sfrf %23 }
   0x9   :  { %p29_p0 = scmp.ne.s32.totalorder %s24_s13, 0 }
   0xb   :  { %28 = shalt.err (%p29_p0)  }

</bundles_post_ra>
